<compile_context>
chip_gen: v6e
topology: v6e:2x2x1
jax: 0.10.0
libtpu: 0.0.40
codegen_flags: <defaults>
</compile_context>

<pallas_src>
import functools

import jax
import jax.numpy as jnp
from jax.experimental import pallas as pl
from jax.experimental.pallas import tpu as pltpu


def _round_up(x, m):
    return ((x + m - 1) // m) * m


def _cdiv(a, b):
    return (a + b - 1) // b


# ---------------------------------------------------------------------------
# One-time hardware / capability queries (module-level caches, never inside jit).
# ---------------------------------------------------------------------------
_VMEM_LIMIT = None


def _vmem_limit_bytes():
    """~75% of per-core VMEM: ~48 MiB on v7x (64 MiB/TC), ~96 MiB on v5e/v6e."""
    global _VMEM_LIMIT
    if _VMEM_LIMIT is None:
        try:
            cap = int(pltpu.get_tpu_info().vmem_capacity_bytes)
        except Exception:
            cap = 64 * 1024 * 1024  # conservative fallback (safe on all gens)
        _VMEM_LIMIT = (cap * 3) // 4
    return _VMEM_LIMIT


_BUF1_OK = None


def _probe_kernel(x_ref, o_ref):
    o_ref[...] = x_ref[...]


def _buffered_one_supported():
    """Probe once whether pl.Buffered(1) (single-buffered resident operand)
    compiles on this JAX/Mosaic version; fall back to default buffering."""
    global _BUF1_OK
    if _BUF1_OK is None:
        try:
            f = pl.pallas_call(
                _probe_kernel,
                out_shape=jax.ShapeDtypeStruct((8, 128), jnp.float32),
                grid=(1,),
                in_specs=[pl.BlockSpec((8, 128), lambda i: (0, 0),
                                       pipeline_mode=pl.Buffered(1))],
                out_specs=pl.BlockSpec((8, 128), lambda i: (0, 0)),
            )
            jax.block_until_ready(f(jnp.zeros((8, 128), jnp.float32)))
            _BUF1_OK = True
        except Exception:
            _BUF1_OK = False
    return _BUF1_OK


# ---------------------------------------------------------------------------
# Kernels
# ---------------------------------------------------------------------------
def _film_kernel_split(x_ref, w_ref, b_ref, gamma_ref, beta_ref):
    # Single fused [tm, K] x [K, 2*Np] MXU GEMM, f32 accumulation + bias,
    # then split into two lane-dense (128-aligned) output stores.
    acc = jnp.dot(x_ref[...], w_ref[...], preferred_element_type=jnp.float32)
    acc = acc + b_ref[...].astype(jnp.float32)
    half = gamma_ref.shape[-1]
    gamma_ref[...] = acc[:, :half].astype(gamma_ref.dtype)
    beta_ref[...] = acc[:, half:].astype(beta_ref.dtype)


def _film_kernel_fused(x_ref, w_ref, b_ref, out_ref):
    # Weight-streaming variant: this grid step only sees a (K, tn) column
    # block of the fused weight, so store the fused output block directly.
    acc = jnp.dot(x_ref[...], w_ref[...], preferred_element_type=jnp.float32)
    out_ref[...] = (acc + b_ref[...].astype(jnp.float32)).astype(out_ref.dtype)


# ---------------------------------------------------------------------------
# One-time parameter preparation (hoisted out of the per-call forward).
# ---------------------------------------------------------------------------
def prepare_film_params(w_gamma, b_gamma, w_beta, b_beta):
    """Fuse the two Linear layers into one [K, 2*Np] weight and [1, 2*Np] bias.

    Each half is zero-padded to Np = round_up(N, 128) so the kernel's output
    stores are lane-dense and the in-kernel gamma/beta split is 128-aligned.
    Call this ONCE at parameter-load time, not per forward pass.
    """
    K, N = w_gamma.shape
    Np = _round_up(max(N, 128), 128)
    pad2 = ((0, 0), (0, Np - N))
    w_fused = jnp.concatenate(
        [jnp.pad(w_gamma, pad2), jnp.pad(w_beta, pad2)], axis=1)       # [K, 2Np]
    b_fused = jnp.concatenate(
        [jnp.pad(b_gamma, (0, Np - N)), jnp.pad(b_beta, (0, Np - N))]
    ).reshape(1, 2 * Np)                                               # [1, 2Np]
    return w_fused, b_fused


# ---------------------------------------------------------------------------
# Forward
# ---------------------------------------------------------------------------
@functools.partial(
    jax.jit,
    static_argnames=("out_feats", "tm", "tn", "single_buffer_weight",
                     "vmem_limit"))
def _film_call(x, w_fused, b_fused, *, out_feats, tm, tn,
               single_buffer_weight, vmem_limit):
    *lead, K = x.shape
    two_np = w_fused.shape[1]
    Np = two_np // 2
    N = out_feats
    x2 = x.reshape(-1, K)
    M = x2.shape[0]
    dt = x.dtype

    def resident_spec(shape):
        if single_buffer_weight:
            return pl.BlockSpec(shape, lambda i: (0, 0),
                                pipeline_mode=pl.Buffered(1))
        return pl.BlockSpec(shape, lambda i: (0, 0))

    if tn == 0:
        # Path A: fused weight fully resident in VMEM; 1-D grid over M with a
        # partial final tile (reads/writes clipped by Pallas).
        grid = (_cdiv(M, tm),)
        gamma_p, beta_p = pl.pallas_call(
            _film_kernel_split,
            out_shape=(jax.ShapeDtypeStruct((M, Np), dt),
                       jax.ShapeDtypeStruct((M, Np), dt)),
            grid=grid,
            in_specs=[
                pl.BlockSpec((tm, K), lambda i: (i, 0)),     # x tile (streamed)
                resident_spec((K, two_np)),                  # fused weight
                resident_spec((1, two_np)),                  # fused bias
            ],
            out_specs=(pl.BlockSpec((tm, Np), lambda i: (i, 0)),
                       pl.BlockSpec((tm, Np), lambda i: (i, 0))),
            compiler_params=pltpu.CompilerParams(
                dimension_semantics=("parallel",),
                vmem_limit_bytes=vmem_limit),
        )(x2, w_fused, b_fused)
    else:
        # Path B: fused weight too large for VMEM -> stream it along the fused
        # N axis in (K, tn) blocks; x tile stays resident across the inner
        # N loop (its index map ignores j). Both axes are "parallel".
        grid = (_cdiv(M, tm), two_np // tn)
        out_f = pl.pallas_call(
            _film_kernel_fused,
            out_shape=jax.ShapeDtypeStruct((M, two_np), dt),
            grid=grid,
            in_specs=[
                pl.BlockSpec((tm, K), lambda i, j: (i, 0)),
                pl.BlockSpec((K, tn), lambda i, j: (0, j)),
                pl.BlockSpec((1, tn), lambda i, j: (0, j)),
            ],
            out_specs=pl.BlockSpec((tm, tn), lambda i, j: (i, j)),
            compiler_params=pltpu.CompilerParams(
                dimension_semantics=("parallel", "parallel"),
                vmem_limit_bytes=vmem_limit),
        )(x2, w_fused, b_fused)
        gamma_p = out_f[:, :Np]
        beta_p = out_f[:, Np:]

    gamma = gamma_p if N == Np else gamma_p[:, :N]
    beta = beta_p if N == Np else beta_p[:, :N]
    return gamma.reshape(*lead, N), beta.reshape(*lead, N)


def film_forward(x, w_fused, b_fused, *, out_feats, tm_max=512):
    """FiLM forward. x: [..., in_feats]; (w_fused, b_fused) from
    prepare_film_params. Returns (gamma, beta), each [..., out_feats]."""
    K = x.shape[-1]
    two_np = w_fused.shape[1]
    M = 1
    for d in x.shape[:-1]:
        M *= d
    M = max(int(M), 1)

    isz = jnp.dtype(x.dtype).itemsize
    vmem_limit = _vmem_limit_bytes()
    budget = int(vmem_limit * 0.9)
    buf1 = _buffered_one_supported()
    w_bufs = 1 if buf1 else 2

    # M tile: <= M (no block ever exceeds the array), multiple of 8, and
    # >= 2 grid steps when M allows (so both v7x TensorCores get work).
    tm = min(tm_max, (M // 8) * 8) if M >= 8 else M
    tm = max(tm, 1)
    if M >= 256 and _cdiv(M, tm) < 2:
        tm = min(tm, _round_up((M + 1) // 2, 8))

    w_resident_bytes = (K * two_np + two_np) * isz * w_bufs

    def fits_resident(tm_):
        # resident weight/bias + double-buffered x tile + 2 double-buffered outs
        return (w_resident_bytes + 2 * tm_ * isz * (K + two_np)) <= budget

    tn = 0
    if fits_resident(min(tm, 128)):
        while tm > 128 and not fits_resident(tm):
            tm = max(128, tm - 128)
    else:
        # Weight-streaming fallback (large K*2N, esp. v7x 64 MiB VMEM).
        for cand_tn in (512, 256):
            if two_np % cand_tn:
                continue
            for cand_tm in range(tm, 0, -128):
                need = 2 * isz * ((K + 1) * cand_tn + cand_tm * (K + cand_tn))
                if need <= budget:
                    tn, tm = cand_tn, cand_tm
                    break
            if tn:
                break
        if tn == 0:
            # TODO(synk): K so large that even a (K, 256) weight block does not
            # fit the VMEM budget; would need a K-split accumulator grid axis.
            tn, tm = 256, min(tm, 128)

    return _film_call(x, w_fused, b_fused,
                      out_feats=int(out_feats), tm=int(tm), tn=int(tn),
                      single_buffer_weight=bool(buf1),
                      vmem_limit=int(vmem_limit))


def init_film_params(key, in_feats, out_feats, dtype=jnp.float32):
    """Deterministic init matching nn.Linear's U(-1/sqrt(in), 1/sqrt(in))."""
    kwg, kbg, kwb, kbb = jax.random.split(key, 4)
    bound = 1.0 / (in_feats ** 0.5)
    # Stored as [K, N] (transpose of PyTorch's [out, in]) for x @ W.
    w_gamma = jax.random.uniform(kwg, (in_feats, out_feats), dtype, -bound, bound)
    b_gamma = jax.random.uniform(kbg, (out_feats,), dtype, -bound, bound)
    w_beta = jax.random.uniform(kwb, (in_feats, out_feats), dtype, -bound, bound)
    b_beta = jax.random.uniform(kbb, (out_feats,), dtype, -bound, bound)
    return w_gamma, b_gamma, w_beta, b_beta


if __name__ == "__main__":
    key = jax.random.PRNGKey(0)
    kx, kp = jax.random.split(key)

    batch, seq, in_feats, out_feats = 2, 8, 32, 32
    x = jax.random.normal(kx, (batch, seq, in_feats), dtype=jnp.float32)
    w_gamma, b_gamma, w_beta, b_beta = init_film_params(kp, in_feats, out_feats)

    # One-time parameter prep (hoisted out of the forward pass).
    w_fused, b_fused = prepare_film_params(w_gamma, b_gamma, w_beta, b_beta)

    gamma, beta = film_forward(x, w_fused, b_fused, out_feats=out_feats)
    jax.block_until_ready((gamma, beta))

    # Reference check against plain JAX (same math as nn.Linear).
    gamma_ref = x @ w_gamma + b_gamma
    beta_ref = x @ w_beta + b_beta
    assert gamma.shape == (batch, seq, out_feats)
    assert beta.shape == (batch, seq, out_feats)
    assert jnp.allclose(gamma, gamma_ref, atol=1e-5, rtol=1e-5)
    assert jnp.allclose(beta, beta_ref, atol=1e-5, rtol=1e-5)

    # Non-divisible, larger-M path (partial final M tile, >= 2 grid steps).
    x_big = jax.random.normal(kx, (3, 137, in_feats), dtype=jnp.float32)
    g2, b2 = film_forward(x_big, w_fused, b_fused, out_feats=out_feats)
    jax.block_until_ready((g2, b2))
    assert jnp.allclose(g2, x_big @ w_gamma + b_gamma, atol=1e-5, rtol=1e-5)
    assert jnp.allclose(b2, x_big @ w_beta + b_beta, atol=1e-5, rtol=1e-5)

    print("KERNEL_OK")
</pallas_src>

<mosaic_0001>
module attributes {stable_mosaic.version = 11 : i64} {
  func.func @_probe_kernel(%arg0: i32, %arg1: memref<8x128xf32, #tpu.memory_space<vmem>>, %arg2: memref<8x128xf32, #tpu.memory_space<vmem>>) attributes {dimension_semantics = [#tpu.dimension_semantics<arbitrary>], iteration_bounds = array<i64: 1>, scalar_prefetch = 0 : i64, scratch_operands = 0 : i64, tpu.core_type = #tpu.core_type<tc>, window_params = [{pipeline_mode = #tpu.pipeline_mode<synchronous>, transform_indices = @transform_0, window_bounds = array<i64: 8, 128>}, {pipeline_mode = #tpu.pipeline_mode<synchronous>, transform_indices = @transform_1, window_bounds = array<i64: 8, 128>}]} {
    %c0 = arith.constant 0 : index
    %c0_0 = arith.constant 0 : index
    %0 = vector.load %arg1[%c0, %c0_0] : memref<8x128xf32, #tpu.memory_space<vmem>>, vector<8x128xf32>
    %c0_1 = arith.constant 0 : index
    %c0_2 = arith.constant 0 : index
    %1 = vector.load %arg2[%c0_1, %c0_2] : memref<8x128xf32, #tpu.memory_space<vmem>>, vector<8x128xf32>
    tpu.vector_store %arg2[%c0_1, %c0_2], %0 {strides = array<i32>} : memref<8x128xf32, #tpu.memory_space<vmem>>, vector<8x128xf32>,
    return
  }
  func.func @transform_0(%arg0: i32) -> (i32, i32) {
    %c0_i32 = arith.constant 0 : i32
    %c0_i32_0 = arith.constant 0 : i32
    %c0_i32_1 = arith.constant 0 : i32
    return %c0_i32, %c0_i32_0 : i32, i32
  }
  func.func @transform_1(%arg0: i32) -> (i32, i32) {
    %c0_i32 = arith.constant 0 : i32
    %c0_i32_0 = arith.constant 0 : i32
    %c0_i32_1 = arith.constant 0 : i32
    return %c0_i32, %c0_i32_0 : i32, i32
  }
}

module attributes {stable_mosaic.version = 11 : i64} {
  func.func @_film_kernel_split(%arg0: i32, %arg1: memref<16x32xf32, #tpu.memory_space<vmem>>, %arg2: memref<32x256xf32, #tpu.memory_space<vmem>>, %arg3: memref<1x256xf32, #tpu.memory_space<vmem>>, %arg4: memref<16x128xf32, #tpu.memory_space<vmem>>, %arg5: memref<16x128xf32, #tpu.memory_space<vmem>>) attributes {dimension_semantics = [#tpu.dimension_semantics<parallel>], iteration_bounds = array<i64: 1>, scalar_prefetch = 0 : i64, scratch_operands = 0 : i64, tpu.core_type = #tpu.core_type<tc>, window_params = [{transform_indices = @transform_0, window_bounds = array<i64: 16, 32>}, {pipeline_mode = #tpu.pipeline_mode<synchronous>, transform_indices = @transform_1, window_bounds = array<i64: 32, 256>}, {pipeline_mode = #tpu.pipeline_mode<synchronous>, transform_indices = @transform_2, window_bounds = array<i64: 1, 256>}, {transform_indices = @transform_3, window_bounds = array<i64: 16, 128>}, {transform_indices = @transform_4, window_bounds = array<i64: 16, 128>}]} {
    %c0 = arith.constant 0 : index
    %c0_0 = arith.constant 0 : index
    %0 = vector.load %arg1[%c0, %c0_0] : memref<16x32xf32, #tpu.memory_space<vmem>>, vector<16x32xf32>
    %c0_1 = arith.constant 0 : index
    %c0_2 = arith.constant 0 : index
    %1 = vector.load %arg2[%c0_1, %c0_2] : memref<32x256xf32, #tpu.memory_space<vmem>>, vector<32x256xf32>
    %cst = arith.constant dense<0.000000e+00> : vector<16x256xf32>
    %2 = tpu.matmul %0, %1, %cst {dimension_numbers = #tpu.dot_dimension_numbers<[1], [0], [0], [1], [0, 0, 1, 1], [], []>} : vector<16x32xf32>, vector<32x256xf32>, vector<16x256xf32> -> vector<16x256xf32>
    %c0_3 = arith.constant 0 : index
    %c0_4 = arith.constant 0 : index
    %3 = vector.load %arg3[%c0_3, %c0_4] : memref<1x256xf32, #tpu.memory_space<vmem>>, vector<1x256xf32>
    %4 = vector.broadcast %3 : vector<1x256xf32> to vector<16x256xf32>
    %5 = arith.addf %2, %4 : vector<16x256xf32>
    %6 = vector.extract_strided_slice %5 {offsets = [0, 0], sizes = [16, 128], strides = [1, 1]} : vector<16x256xf32> to vector<16x128xf32>
    %c0_5 = arith.constant 0 : index
    %c0_6 = arith.constant 0 : index
    %7 = vector.load %arg4[%c0_5, %c0_6] : memref<16x128xf32, #tpu.memory_space<vmem>>, vector<16x128xf32>
    tpu.vector_store %arg4[%c0_5, %c0_6], %6 {strides = array<i32>} : memref<16x128xf32, #tpu.memory_space<vmem>>, vector<16x128xf32>,
    %8 = vector.extract_strided_slice %5 {offsets = [0, 128], sizes = [16, 128], strides = [1, 1]} : vector<16x256xf32> to vector<16x128xf32>
    %c0_7 = arith.constant 0 : index
    %c0_8 = arith.constant 0 : index
    %9 = vector.load %arg5[%c0_7, %c0_8] : memref<16x128xf32, #tpu.memory_space<vmem>>, vector<16x128xf32>
    tpu.vector_store %arg5[%c0_7, %c0_8], %8 {strides = array<i32>} : memref<16x128xf32, #tpu.memory_space<vmem>>, vector<16x128xf32>,
    return
  }
  func.func @transform_0(%arg0: i32) -> (i32, i32) {
    %c0_i32 = arith.constant 0 : i32
    %c0_i32_0 = arith.constant 0 : i32
    return %arg0, %c0_i32 : i32, i32
  }
  func.func @transform_1(%arg0: i32) -> (i32, i32) {
    %c0_i32 = arith.constant 0 : i32
    %c0_i32_0 = arith.constant 0 : i32
    %c0_i32_1 = arith.constant 0 : i32
    return %c0_i32, %c0_i32_0 : i32, i32
  }
  func.func @transform_2(%arg0: i32) -> (i32, i32) {
    %c0_i32 = arith.constant 0 : i32
    %c0_i32_0 = arith.constant 0 : i32
    %c0_i32_1 = arith.constant 0 : i32
    return %c0_i32, %c0_i32_0 : i32, i32
  }
  func.func @transform_3(%arg0: i32) -> (i32, i32) {
    %c0_i32 = arith.constant 0 : i32
    %c0_i32_0 = arith.constant 0 : i32
    return %arg0, %c0_i32 : i32, i32
  }
  func.func @transform_4(%arg0: i32) -> (i32, i32) {
    %c0_i32 = arith.constant 0 : i32
    %c0_i32_0 = arith.constant 0 : i32
    return %arg0, %c0_i32 : i32, i32
  }
}

</mosaic_0001>

<bundles_post_ra>
// kernel: tpu_custom_call.1
= control target key start
LH: loop header
LB: loop body
LE: loop exit
PB: predicated region body
PF: predicated region fallthrough
CT: control target
= control target key end

     0   :  { %6 = vsyncpa [#allocation3], 0  ;;  %s102_s0 = inlined_call_operand.hbm [shape: f32[8,128], index: 0, kind: input, shape index: {}]   ;;  %s103_s1 = inlined_call_operand.hbm [shape: f32[8,128], index: 1, kind: output, shape index: {}]  }
   0x1   :  { %7 = vsyncpa [#allocation4], 0  ;;  %s84_s6 = smov [#allocation2]  }
   0x2   :  { %s14_s7 = sshll.u32 %s84_s6, 4  ;;  %s15_s7 = int_to_ptr.vmem [resolvable:$true] %s14_s7 }
   0x3   :  { %s48_s8 = scalar_lea.vmem %s15_s7, 128  ;;  %p53_p1 = scmp.lt.s32.totalorder %s15_s7, %s15_s7 }
   0x4   :  { %p49_p0 = scmp.ne.s32.totalorder %s15_s7, %s48_s8  ;;  %p54_p2 = scmp.lt.s32.totalorder %s48_s8, %s48_s8 }
   0x6   :  { %p55_p3 = por %p54_p2, %p53_p1 }
   0x8   :  { %p56_p4 = pnand %p55_p3, %p49_p0 }
   0xa   :  { %59 = shalt.err (!%p56_p4)
}
   0xb   :  { %17 = dma.hbm_to_vmem [thread:$0]  %s102_s0, 128, %s15_s7, [#allocation3]  }
   0xc   :  { %80 = dma.done.wait [#allocation3], 128  }
   0xd   :  { %81 = vsyncadd [#allocation3], 4294967168  ;;  %s85_s11 = smov [#allocation5]   ;;  %v21_v0 = vld [vmem:[#allocation2] sm:$0xff] }
   0xe   :  { %s29_s12 = sshll.u32 %s85_s11, 4  ;;  %22 = vst [vmem:[#allocation5] sm:$0xff] %v21_v0  ;;  %s30_s12 = int_to_ptr.vmem [resolvable:$true] %s29_s12 }
   0xf   :  { %s60_s13 = scalar_lea.vmem %s30_s12, 128  ;;  %p65_p6 = scmp.lt.s32.totalorder %s30_s12, %s30_s12 }
  0x10   :  { %p61_p5 = scmp.ne.s32.totalorder %s30_s12, %s60_s13  ;;  %p66_p7 = scmp.lt.s32.totalorder %s60_s13, %s60_s13 }
  0x12   :  { %p67_p8 = por %p66_p7, %p65_p6 }
  0x14   :  { %p68_p9 = pnand %p67_p8, %p61_p5 }
  0x16   :  { %71 = shalt.err (!%p68_p9)
}
  0x17   :  { %32 = dma.vmem_to_hbm [thread:$0]  %s30_s12, 128, %s103_s1, [#allocation4]  }
  0x18   :  { %82 = dma.done.wait [#allocation4], 128  }
  0x19   :  { %83 = vsyncadd [#allocation4], 4294967168 }
  0x1a   :  { %36 = vsyncpa [#allocation3], 1 }
  0x1b   :  { %37 = vsyncpa [#allocation4], 1 }

// kernel: _film_call.1
= control target key start
LH: loop header
LB: loop body
LE: loop exit
PB: predicated region body
PF: predicated region fallthrough
CT: control target
= control target key end

     0   :  { %10 = vsyncpa [#allocation3], 0  ;;  %s278_s0 = inlined_call_operand.hbm [shape: f32[16,32], index: 0, kind: input, shape index: {}]   ;;  %s279_s1 = inlined_call_operand.hbm [shape: f32[32,256], index: 1, kind: input, shape index: {}]   ;;  %s280_s2 = inlined_call_operand.vmem [shape: f32[1,256], index: 2, kind: input, shape index: {}]   ;;  %s281_s3 = inlined_call_operand.vmem [shape: f32[16,128], index: 3, kind: output, shape index: {0}]   ;;  %s282_s4 = inlined_call_operand.vmem [shape: f32[16,128], index: 4, kind: output, shape index: {1}]  }
   0x1   :  { %11 = vsyncpa [#allocation5], 0  ;;  %s225_s15 = smov [#allocation2]  }
   0x2   :  { %s17_s16 = sshll.u32 %s225_s15, 4  ;;  %s18_s16 = int_to_ptr.vmem [resolvable:$true] %s17_s16 }
   0x3   :  { %s189_s17 = scalar_lea.vmem %s18_s16, 256  ;;  %p194_p1 = scmp.lt.s32.totalorder %s18_s16, %s18_s16 }
   0x4   :  { %p190_p0 = scmp.ne.s32.totalorder %s18_s16, %s189_s17  ;;  %p195_p2 = scmp.lt.s32.totalorder %s189_s17, %s189_s17 }
   0x6   :  { %p196_p3 = por %p195_p2, %p194_p1 }
   0x8   :  { %p197_p4 = pnand %p196_p3, %p190_p0 }
   0xa   :  { %200 = shalt.err (!%p197_p4)
}
   0xb   :  { %s226_s18 = smov 128   ;;  %s227_s19 = smov 8  }
   0xc   :  { %23 = dma.hbm_to_vmem [thread:$0]  %s278_s0, 256, %s18_s16, [#allocation3], %s226_s18, %s226_s18, %s227_s19  }
   0xd   :  { %s228_s22 = smov [#allocation4]  }
   0xe   :  { %s29_s23 = sshll.u32 %s228_s22, 4  ;;  %s30_s23 = int_to_ptr.vmem [resolvable:$true] %s29_s23 }
   0xf   :  { %s209_s24 = scalar_lea.vmem %s30_s23, 1024  ;;  %p214_p6 = scmp.lt.s32.totalorder %s30_s23, %s30_s23 }
  0x10   :  { %p210_p5 = scmp.ne.s32.totalorder %s30_s23, %s209_s24  ;;  %p215_p7 = scmp.lt.s32.totalorder %s209_s24, %s209_s24 }
  0x12   :  { %p216_p8 = por %p215_p7, %p214_p6 }
  0x14   :  { %p217_p9 = pnand %p216_p8, %p210_p5 }
  0x16   :  { %220 = shalt.err (!%p217_p9)
}
  0x17   :  { %s229_s25 = smov 256   ;;  %s230_s26 = smov 16  }
  0x18   :  { %35 = dma.hbm_to_vmem [thread:$0]  %s279_s1, 1024, %s30_s23, [#allocation5], %s229_s25, %s229_s25, %s230_s26  }
  0x19   :  { %221 = dma.done.wait [#allocation3], 256  }
  0x1a   :  { %222 = vsyncadd [#allocation3], 4294967040 }
  0x1b   :  { %223 = dma.done.wait [#allocation5], 1024  }
  0x1c   :  { %224 = vsyncadd [#allocation5], 4294966272  ;;  %v231_v0 = vmov 0.0   ;;  %v53_v1 = vld [vmem:[#allocation4 + $0x38] sm:$0xff]  ;;  %v52_v2 = vld [vmem:[#allocation4 + $0x30] sm:$0xff]  ;;  %vm66_vm0 = vcmask 261120   ;;  %v56_v11 = vlaneseq }
  0x1d   :  { %137 = vmatprep.mubr.f32.mxu0 %v231_v0  ;;  %143 = vmatprep.mubr.f32.mxu1 %v231_v0  ;;  %v51_v3 = vld [vmem:[#allocation4 + $0x28] sm:$0xff]  ;;  %v50_v4 = vld [vmem:[#allocation4 + $0x20] sm:$0xff]  ;;  %v49_v5 = vld [vmem:[#allocation4 + $0x18] sm:$0xff] }
  0x1e   :  { %97 = vmatprep.subr.mxu0 %v53_v1  ;;  %166 = vmatprep.subr.mxu1 %v53_v1  ;;  %v48_v6 = vld [vmem:[#allocation4 + $0x10] sm:$0xff]  ;;  %v47_v7 = vld [vmem:[#allocation4 + $0x8] sm:$0xff]  ;;  %v46_v8 = vld [vmem:[#allocation4] sm:$0xff]  ;;  %v57_v12 = vshrl.u32 %v56_v11, 7 }
  0x1f   :  { %98 = vmatpush1.msra.mxu0 %v52_v2  ;;  %170 = vmatpush1.msra.mxu1 %v52_v2  ;;  %v44_v9 = vld [vmem:[#allocation2] sm:$0xff]  ;;  %v45_v10 = vld [vmem:[#allocation2 + $0x8] sm:$0xff] }
  0x20   :  { %99 = vmatprep.subr.mxu0 %v51_v3  ;;  %167 = vmatprep.subr.mxu1 %v51_v3  ;;  %v58_v13 = vsub.s32 0, %v57_v12  ;;  %v54_v14 = vld [vmem:[%s280_s2] sm:$0x3]  ;;  %v62_v15 = vsub.s32 1, %v57_v12 }
  0x21   :  { %100 = vmatpush1.msra.mxu0 %v50_v4  ;;  %171 = vmatpush1.msra.mxu1 %v50_v4 }
  0x22   :  { %101 = vmatprep.subr.mxu0 %v49_v5  ;;  %168 = vmatprep.subr.mxu1 %v49_v5  ;;  %v59_v16 = vrot.slane %v54_v14, %v58_v13  ;;  %v63_v17 = vrot.slane %v54_v14, %v62_v15 }
  0x23   :  { %102 = vmatpush1.msra.mxu0 %v48_v6  ;;  %172 = vmatpush1.msra.mxu1 %v48_v6 }
  0x24   :  { %103 = vmatprep.subr.mxu0 %v47_v7  ;;  %169 = vmatprep.subr.mxu1 %v47_v7 }
  0x25   :  { %104 = vmatpush1.msra.mxu0 %v46_v8  ;;  %173 = vmatpush1.msra.mxu1 %v46_v8 }
  0x26   :  { %164 = vmatmul.mubr.msk.f32.vlgmr.msra.gmra.mxu0 %vm66_vm0, %v44_v9  ;;  %165 = vmatmul.mubr.msk.f32.vlgmr.msra.gmra.mxu1 %vm66_vm0, %v45_v10 }
  0xe6   :  { %v139_v18 = vpop.f32.mrf.mxu0  ;;  %v145_v19 = vpop.f32.mrf.mxu1 }
  0xe7   :  { %v140_v20 = vadd.f32 %v139_v18, %v59_v16  ;;  %v146_v21 = vadd.f32 %v145_v19, %v59_v16 }
  0xe8   :  { %v141_v22 = vpop.f32.mrf.mxu0  ;;  %v147_v23 = vpop.f32.mrf.mxu1 }
  0xe9   :  { %150 = vst [vmem:[%s281_s3] sm:$0xff] %v140_v20  ;;  %151 = vst [vmem:[%s281_s3 + $0x8] sm:$0xff] %v146_v21  ;;  %v142_v24 = vadd.f32 %v141_v22, %v63_v17  ;;  %v148_v25 = vadd.f32 %v147_v23, %v63_v17 }
  0xeb   :  { %152 = vst [vmem:[%s282_s4] sm:$0xff] %v142_v24  ;;  %153 = vst [vmem:[%s282_s4 + $0x8] sm:$0xff] %v148_v25 }
  0xec   :  { %162 = vsyncpa [#allocation3], 1 }
  0xed   :  { %163 = vsyncpa [#allocation5], 1 }

</bundles_post_ra>
